<compile_context>
chip_gen: v5e
topology: v5e:2x2
jax: 0.10.0
libtpu: 0.0.40
codegen_flags: <defaults>
</compile_context>

<pallas_src>
import functools

import jax
import jax.numpy as jnp
import numpy as np
from jax.experimental import pallas as pl
from jax.experimental.pallas import tpu as pltpu


# ----------------------------------------------------------------------------
# Fused Pallas kernel: all TemporalBlocks + last-step Linear + Sigmoid
# ----------------------------------------------------------------------------
def _tcn_fused_kernel(*refs, K, L, Nb, block_meta, o_pad):
    """refs layout (in order):
         x_ref                          (Nb, L, Cin_pad)  bf16  input activations
         per block: w1, b1, w2, b2 [, wd, bd if has_downsample]
         w_lin, b_lin                   head weights
         o_ref                          (Nb, 1, O_pad)    f32   output
       block_meta: tuple of (dilation, Ci_pad, Co_pad, has_downsample), static.
    """
    it = iter(refs)
    x_ref = next(it)
    block_refs = []
    for (_, _, _, has_ds) in block_meta:
        n = 6 if has_ds else 4
        block_refs.append(tuple(next(it) for _ in range(n)))
    w_lin_ref = next(it)
    b_lin_ref = next(it)
    o_ref = next(it)

    def causal_conv(x, w_ref, b_ref, d, ci, co):
        """Dilated causal conv + bias + ReLU as a single MXU matmul.

        out[t] = relu(sum_k w[k] . x[t - (K-1-k)*d] + b)   (zeros for t-... < 0)
        Taps are assembled as a value: the ragged sublane shift (zero prefix of
        (K-1-k)*d rows) is done in f32 (robust lowering), taps are lane-concatenated
        into a (Nb*L, K*ci) matrix and cast to bf16 only at the MXU feed.
        """
        xf = x.astype(jnp.float32)
        taps = []
        for k in range(K):
            off = min((K - 1 - k) * d, L)
            if off == 0:
                taps.append(xf)
            else:
                taps.append(jnp.concatenate(
                    [jnp.zeros((Nb, off, ci), jnp.float32), xf[:, :L - off, :]],
                    axis=1))
        col = taps[0] if K == 1 else jnp.concatenate(taps, axis=-1)   # (Nb, L, K*ci)
        acc = jnp.dot(col.reshape(Nb * L, K * ci).astype(w_ref.dtype), w_ref[...],
                      preferred_element_type=jnp.float32)
        acc = acc.reshape(Nb, L, co) + b_ref[...]
        return jnp.maximum(acc, 0.0)                                   # f32

    x = x_ref[...]                                                     # bf16
    for (d, ci, co, has_ds), brefs in zip(block_meta, block_refs):
        if has_ds:
            w1, b1, w2, b2, wd, bd = brefs
        else:
            w1, b1, w2, b2 = brefs
        h = causal_conv(x, w1, b1, d, ci, co).astype(jnp.bfloat16)     # conv1+bias+relu
        # dropout1: identity at inference
        out = causal_conv(h, w2, b2, d, co, co)                        # conv2+bias+relu (f32)
        # dropout2: identity at inference
        if has_ds:                                                     # 1x1 downsample residual
            res = jnp.dot(x.reshape(Nb * L, ci), wd[...],
                          preferred_element_type=jnp.float32).reshape(Nb, L, co)
            res = res + bd[...]
        else:
            res = x.astype(jnp.float32)
        x = jnp.maximum(out + res, 0.0).astype(jnp.bfloat16)

    # Head: Linear + Sigmoid on the last time step (fused -> no extra HBM trip).
    z = jnp.dot(x[:, L - 1, :], w_lin_ref[...], preferred_element_type=jnp.float32)
    z = z + b_lin_ref[...]
    o_ref[...] = (1.0 / (1.0 + jnp.exp(-z))).reshape(Nb, 1, o_pad)


# ----------------------------------------------------------------------------
# Wrapper
# ----------------------------------------------------------------------------
def _round_up(n, m):
    return ((n + m - 1) // m) * m


def _auto_batch_tile(N, l_used):
    """~1024 matmul rows per grid step, but keep >=2 grid steps (v7x dual-TC)."""
    cap = max(1, min(N // 2 if N >= 2 else N, max(1, 1024 // max(l_used, 1))))
    best = 1
    for t in range(1, cap + 1):
        if N % t == 0:
            best = t
    return best


def tcn_forward(inputs_ncl, packed, *, batch_tile=None):
    """inputs_ncl: (N, C_in, L) -- same convention as the PyTorch module."""
    N, c_in, L = inputs_ncl.shape
    K = packed["kernel_size"]
    cin_pad = packed["cin_pad"]
    o_pad = packed["out_pad"]
    n_blocks = len(packed["blocks"])

    # Only the last timestep feeds the Linear head -> only its receptive field
    # through the conv stack needs to be computed.  Round up to a sublane multiple.
    rf = 1 + 2 * (K - 1) * (2 ** n_blocks - 1)
    l_used = min(L, _round_up(rf, 8))

    x = jnp.transpose(inputs_ncl, (0, 2, 1))[:, L - l_used:, :]    # NCL -> NLC, suffix
    x = jnp.pad(x, ((0, 0), (0, 0), (0, cin_pad - c_in)))          # lane-pad channels
    x = x.astype(jnp.bfloat16)                                     # halve HBM->VMEM bytes

    if batch_tile is None:
        batch_tile = _auto_batch_tile(N, l_used)
    Nb = batch_tile
    assert N % Nb == 0, "batch_tile must divide N"

    flat_inputs = [x]
    in_specs = [pl.BlockSpec((Nb, l_used, cin_pad), lambda i: (i, 0, 0))]
    block_meta = []
    flops = 0
    for bi, blk in enumerate(packed["blocks"]):
        d = 2 ** bi
        names = ["w1", "b1", "w2", "b2"]
        if blk["has_downsample"]:
            names += ["wd", "bd"]                    # no dummy wd/bd DMA otherwise
        for nm in names:
            w = blk[nm]
            flat_inputs.append(w)
            in_specs.append(pl.BlockSpec(w.shape, lambda i: (0, 0)))
        block_meta.append((d, blk["ci"], blk["co"], blk["has_downsample"]))
        flops += 2 * N * l_used * K * blk["ci"] * blk["co"]
        flops += 2 * N * l_used * K * blk["co"] * blk["co"]
        if blk["has_downsample"]:
            flops += 2 * N * l_used * blk["ci"] * blk["co"]
    for nm in ("w_lin", "b_lin"):
        flat_inputs.append(packed[nm])
        in_specs.append(pl.BlockSpec(packed[nm].shape, lambda i: (0, 0)))
    flops += 2 * N * packed["w_lin"].shape[0] * o_pad

    bytes_accessed = sum(int(a.size) * a.dtype.itemsize for a in flat_inputs)
    bytes_accessed += N * 1 * o_pad * 4

    kernel = functools.partial(_tcn_fused_kernel, K=K, L=l_used, Nb=Nb,
                               block_meta=tuple(block_meta), o_pad=o_pad)

    out = pl.pallas_call(
        kernel,
        out_shape=jax.ShapeDtypeStruct((N, 1, o_pad), jnp.float32),
        grid=(N // Nb,),
        in_specs=in_specs,
        out_specs=pl.BlockSpec((Nb, 1, o_pad), lambda i: (i, 0, 0)),
        compiler_params=pltpu.CompilerParams(
            dimension_semantics=("parallel",),        # shard batch across TCs (v7x)
            vmem_limit_bytes=48 * 1024 * 1024),       # safe on v7x (64 MiB); raisable on v5e/v6e
        cost_estimate=pl.CostEstimate(
            flops=int(flops),
            transcendentals=int(N * o_pad),
            bytes_accessed=int(bytes_accessed)),
    )(*flat_inputs)
    return out[:, 0, :packed["out_size"]]


# ----------------------------------------------------------------------------
# Deterministic parameter init (logical shapes from the module's __init__)
# ----------------------------------------------------------------------------
def init_params(seed, input_size, output_size, num_channels, kernel_size):
    key = jax.random.PRNGKey(seed)
    blocks = []
    c_in = input_size
    for c_out in num_channels:
        key, k1, k2, k3, k4, k5, k6 = jax.random.split(key, 7)
        w1 = 0.1 * jax.random.normal(k1, (kernel_size, c_in, c_out), jnp.float32)
        b1 = 0.1 * jax.random.normal(k2, (1, c_out), jnp.float32)
        w2 = 0.1 * jax.random.normal(k3, (kernel_size, c_out, c_out), jnp.float32)
        b2 = 0.1 * jax.random.normal(k4, (1, c_out), jnp.float32)
        has_ds = (c_in != c_out)
        if has_ds:
            wd = 0.1 * jax.random.normal(k5, (c_in, c_out), jnp.float32)
            bd = 0.1 * jax.random.normal(k6, (1, c_out), jnp.float32)
        else:
            wd = jnp.zeros((c_in, c_out), jnp.float32)
            bd = jnp.zeros((1, c_out), jnp.float32)
        blocks.append(dict(w1=w1, b1=b1, w2=w2, b2=b2, wd=wd, bd=bd,
                           has_downsample=has_ds))
        c_in = c_out
    key, kl1, kl2 = jax.random.split(key, 3)
    w_lin = 0.1 * jax.random.normal(kl1, (c_in, output_size), jnp.float32)
    b_lin = 0.1 * jax.random.normal(kl2, (1, output_size), jnp.float32)
    return dict(blocks=blocks, w_lin=w_lin, b_lin=b_lin, kernel_size=kernel_size)


def _pad_to(n, m=128):
    return ((n + m - 1) // m) * m


def pack_params(params, compute_dtype=jnp.bfloat16):
    """Lane-pad channels to multiples of 128, flatten conv taps into (K*Ci, Co)
    matmul weights, cast matmul weights to the MXU compute dtype (biases stay f32)."""
    K = params["kernel_size"]
    packed_blocks = []
    for blk in params["blocks"]:
        _, ci, co = blk["w1"].shape
        ci_p, co_p = _pad_to(ci), _pad_to(co)
        w1 = jnp.zeros((K, ci_p, co_p), jnp.float32).at[:, :ci, :co].set(blk["w1"])
        w1 = w1.reshape(K * ci_p, co_p).astype(compute_dtype)
        b1 = jnp.zeros((1, co_p), jnp.float32).at[:, :co].set(blk["b1"])
        w2 = jnp.zeros((K, co_p, co_p), jnp.float32).at[:, :co, :co].set(blk["w2"])
        w2 = w2.reshape(K * co_p, co_p).astype(compute_dtype)
        b2 = jnp.zeros((1, co_p), jnp.float32).at[:, :co].set(blk["b2"])
        entry = dict(w1=w1, b1=b1, w2=w2, b2=b2, ci=ci_p, co=co_p,
                     has_downsample=blk["has_downsample"])
        if blk["has_downsample"]:
            wd = jnp.zeros((ci_p, co_p), jnp.float32).at[:ci, :co].set(blk["wd"])
            bd = jnp.zeros((1, co_p), jnp.float32).at[:, :co].set(blk["bd"])
            entry.update(wd=wd.astype(compute_dtype), bd=bd)
        packed_blocks.append(entry)
    clast, out_size = params["w_lin"].shape
    clast_p, o_p = _pad_to(clast), _pad_to(out_size)
    w_lin = jnp.zeros((clast_p, o_p), jnp.float32).at[:clast, :out_size].set(
        params["w_lin"]).astype(compute_dtype)
    b_lin = jnp.zeros((1, o_p), jnp.float32).at[:, :out_size].set(params["b_lin"])
    cin_pad = _pad_to(params["blocks"][0]["w1"].shape[1])
    return dict(blocks=packed_blocks, w_lin=w_lin, b_lin=b_lin, kernel_size=K,
                cin_pad=cin_pad, out_size=out_size, out_pad=o_p)


# ----------------------------------------------------------------------------
# Pure-JAX reference (f32) for a correctness sanity check
# ----------------------------------------------------------------------------
def _ref_causal_conv(x_nlc, w, b, d):
    K = w.shape[0]
    N, L, _ = x_nlc.shape
    P = (K - 1) * d
    xp = jnp.pad(x_nlc, ((0, 0), (P, 0), (0, 0)))
    acc = jnp.zeros((N, L, w.shape[-1]), jnp.float32)
    for k in range(K):
        acc = acc + jnp.einsum("nli,io->nlo", xp[:, k * d:k * d + L, :], w[k])
    return acc + b


def tcn_forward_ref(inputs_ncl, params):
    x = jnp.transpose(inputs_ncl, (0, 2, 1)).astype(jnp.float32)
    for i, blk in enumerate(params["blocks"]):
        d = 2 ** i
        h = jax.nn.relu(_ref_causal_conv(x, blk["w1"], blk["b1"], d))
        out = jax.nn.relu(_ref_causal_conv(h, blk["w2"], blk["b2"], d))
        if blk["has_downsample"]:
            res = jnp.einsum("nli,io->nlo", x, blk["wd"]) + blk["bd"]
        else:
            res = x
        x = jax.nn.relu(out + res)
    z = x[:, -1, :] @ params["w_lin"] + params["b_lin"]
    return jax.nn.sigmoid(z)


# ----------------------------------------------------------------------------
if __name__ == "__main__":
    # Small shapes consistent with the module: inputs (N, C_in, L_in)
    N, C_IN, L = 2, 4, 16
    OUTPUT_SIZE = 3
    NUM_CHANNELS = [8, 8]
    KERNEL_SIZE = 2
    DROPOUT = 0.2  # inference: identity

    params = init_params(0, C_IN, OUTPUT_SIZE, NUM_CHANNELS, KERNEL_SIZE)
    packed = pack_params(params, compute_dtype=jnp.bfloat16)

    key = jax.random.PRNGKey(0)
    inputs = jax.random.normal(key, (N, C_IN, L), jnp.float32)

    out = jax.block_until_ready(tcn_forward(inputs, packed))
    ref = jax.block_until_ready(tcn_forward_ref(inputs, params))

    # bf16 MXU/activation path with f32 accumulation -> relaxed tolerance vs. f32 ref.
    np.testing.assert_allclose(np.asarray(out), np.asarray(ref),
                               rtol=2e-2, atol=2e-2)
    assert out.shape == (N, OUTPUT_SIZE)

    print("KERNEL_OK")
</pallas_src>

<mosaic_0001>
module attributes {stable_mosaic.version = 11 : i64} {
  func.func @_tcn_fused_kernel(%arg0: i32, %arg1: memref<1x8x128xbf16, #tpu.memory_space<vmem>>, %arg2: memref<256x128xbf16, #tpu.memory_space<vmem>>, %arg3: memref<1x128xf32, #tpu.memory_space<vmem>>, %arg4: memref<256x128xbf16, #tpu.memory_space<vmem>>, %arg5: memref<1x128xf32, #tpu.memory_space<vmem>>, %arg6: memref<128x128xbf16, #tpu.memory_space<vmem>>, %arg7: memref<1x128xf32, #tpu.memory_space<vmem>>, %arg8: memref<256x128xbf16, #tpu.memory_space<vmem>>, %arg9: memref<1x128xf32, #tpu.memory_space<vmem>>, %arg10: memref<256x128xbf16, #tpu.memory_space<vmem>>, %arg11: memref<1x128xf32, #tpu.memory_space<vmem>>, %arg12: memref<128x128xbf16, #tpu.memory_space<vmem>>, %arg13: memref<1x128xf32, #tpu.memory_space<vmem>>, %arg14: memref<1x1x128xf32, #tpu.memory_space<vmem>>) attributes {dimension_semantics = [#tpu.dimension_semantics<parallel>], iteration_bounds = array<i64: 2>, scalar_prefetch = 0 : i64, scratch_operands = 0 : i64, tpu.core_type = #tpu.core_type<tc>, window_params = [{transform_indices = @transform_0, window_bounds = array<i64: 1, 8, 128>}, {pipeline_mode = #tpu.pipeline_mode<synchronous>, transform_indices = @transform_1, window_bounds = array<i64: 256, 128>}, {pipeline_mode = #tpu.pipeline_mode<synchronous>, transform_indices = @transform_2, window_bounds = array<i64: 1, 128>}, {pipeline_mode = #tpu.pipeline_mode<synchronous>, transform_indices = @transform_3, window_bounds = array<i64: 256, 128>}, {pipeline_mode = #tpu.pipeline_mode<synchronous>, transform_indices = @transform_4, window_bounds = array<i64: 1, 128>}, {pipeline_mode = #tpu.pipeline_mode<synchronous>, transform_indices = @transform_5, window_bounds = array<i64: 128, 128>}, {pipeline_mode = #tpu.pipeline_mode<synchronous>, transform_indices = @transform_6, window_bounds = array<i64: 1, 128>}, {pipeline_mode = #tpu.pipeline_mode<synchronous>, transform_indices = @transform_7, window_bounds = array<i64: 256, 128>}, {pipeline_mode = #tpu.pipeline_mode<synchronous>, transform_indices = @transform_8, window_bounds = array<i64: 1, 128>}, {pipeline_mode = #tpu.pipeline_mode<synchronous>, transform_indices = @transform_9, window_bounds = array<i64: 256, 128>}, {pipeline_mode = #tpu.pipeline_mode<synchronous>, transform_indices = @transform_10, window_bounds = array<i64: 1, 128>}, {pipeline_mode = #tpu.pipeline_mode<synchronous>, transform_indices = @transform_11, window_bounds = array<i64: 128, 128>}, {pipeline_mode = #tpu.pipeline_mode<synchronous>, transform_indices = @transform_12, window_bounds = array<i64: 1, 128>}, {transform_indices = @transform_13, window_bounds = array<i64: 1, 1, 128>}]} {
    %c0 = arith.constant 0 : index
    %c0_0 = arith.constant 0 : index
    %c0_1 = arith.constant 0 : index
    %0 = vector.load %arg1[%c0, %c0_0, %c0_1] : memref<1x8x128xbf16, #tpu.memory_space<vmem>>, vector<1x8x128xbf16>
    %1 = arith.extf %0 : vector<1x8x128xbf16> to vector<1x8x128xf32>
    %cst = arith.constant 0.000000e+00 : f32
    %2 = vector.broadcast %cst : f32 to vector<1x1x128xf32>
    %3 = vector.extract_strided_slice %1 {offsets = [0, 0, 0], sizes = [1, 7, 128], strides = [1, 1, 1]} : vector<1x8x128xf32> to vector<1x7x128xf32>
    %4 = tpu.concatenate %2, %3 in 1 : vector<1x1x128xf32>, vector<1x7x128xf32> -> vector<1x8x128xf32>
    %5 = tpu.concatenate %4, %1 in 2 : vector<1x8x128xf32>, vector<1x8x128xf32> -> vector<1x8x256xf32>
    %6 = vector.shape_cast %5 : vector<1x8x256xf32> to vector<8x256xf32>
    %7 = arith.truncf %6 : vector<8x256xf32> to vector<8x256xbf16>
    %c0_2 = arith.constant 0 : index
    %c0_3 = arith.constant 0 : index
    %8 = vector.load %arg2[%c0_2, %c0_3] : memref<256x128xbf16, #tpu.memory_space<vmem>>, vector<256x128xbf16>
    %cst_4 = arith.constant dense<0.000000e+00> : vector<8x128xf32>
    %9 = tpu.matmul %7, %8, %cst_4 {dimension_numbers = #tpu.dot_dimension_numbers<[1], [0], [0], [1], [0, 0, 1, 1], [], []>} : vector<8x256xbf16>, vector<256x128xbf16>, vector<8x128xf32> -> vector<8x128xf32>
    %10 = vector.shape_cast %9 : vector<8x128xf32> to vector<1x8x128xf32>
    %c0_5 = arith.constant 0 : index
    %c0_6 = arith.constant 0 : index
    %11 = vector.load %arg3[%c0_5, %c0_6] : memref<1x128xf32, #tpu.memory_space<vmem>>, vector<1x128xf32>
    %12 = vector.shape_cast %11 : vector<1x128xf32> to vector<1x1x128xf32>
    %13 = vector.broadcast %12 : vector<1x1x128xf32> to vector<1x8x128xf32>
    %14 = arith.addf %10, %13 : vector<1x8x128xf32>
    %cst_7 = arith.constant 0.000000e+00 : f32
    %15 = vector.broadcast %cst_7 : f32 to vector<1x8x128xf32>
    %16 = arith.maximumf %14, %15 : vector<1x8x128xf32>
    %17 = arith.truncf %16 : vector<1x8x128xf32> to vector<1x8x128xbf16>
    %18 = arith.extf %17 : vector<1x8x128xbf16> to vector<1x8x128xf32>
    %cst_8 = arith.constant 0.000000e+00 : f32
    %19 = vector.broadcast %cst_8 : f32 to vector<1x1x128xf32>
    %20 = vector.extract_strided_slice %18 {offsets = [0, 0, 0], sizes = [1, 7, 128], strides = [1, 1, 1]} : vector<1x8x128xf32> to vector<1x7x128xf32>
    %21 = tpu.concatenate %19, %20 in 1 : vector<1x1x128xf32>, vector<1x7x128xf32> -> vector<1x8x128xf32>
    %22 = tpu.concatenate %21, %18 in 2 : vector<1x8x128xf32>, vector<1x8x128xf32> -> vector<1x8x256xf32>
    %23 = vector.shape_cast %22 : vector<1x8x256xf32> to vector<8x256xf32>
    %24 = arith.truncf %23 : vector<8x256xf32> to vector<8x256xbf16>
    %c0_9 = arith.constant 0 : index
    %c0_10 = arith.constant 0 : index
    %25 = vector.load %arg4[%c0_9, %c0_10] : memref<256x128xbf16, #tpu.memory_space<vmem>>, vector<256x128xbf16>
    %cst_11 = arith.constant dense<0.000000e+00> : vector<8x128xf32>
    %26 = tpu.matmul %24, %25, %cst_11 {dimension_numbers = #tpu.dot_dimension_numbers<[1], [0], [0], [1], [0, 0, 1, 1], [], []>} : vector<8x256xbf16>, vector<256x128xbf16>, vector<8x128xf32> -> vector<8x128xf32>
    %27 = vector.shape_cast %26 : vector<8x128xf32> to vector<1x8x128xf32>
    %c0_12 = arith.constant 0 : index
    %c0_13 = arith.constant 0 : index
    %28 = vector.load %arg5[%c0_12, %c0_13] : memref<1x128xf32, #tpu.memory_space<vmem>>, vector<1x128xf32>
    %29 = vector.shape_cast %28 : vector<1x128xf32> to vector<1x1x128xf32>
    %30 = vector.broadcast %29 : vector<1x1x128xf32> to vector<1x8x128xf32>
    %31 = arith.addf %27, %30 : vector<1x8x128xf32>
    %cst_14 = arith.constant 0.000000e+00 : f32
    %32 = vector.broadcast %cst_14 : f32 to vector<1x8x128xf32>
    %33 = arith.maximumf %31, %32 : vector<1x8x128xf32>
    %34 = vector.shape_cast %0 : vector<1x8x128xbf16> to vector<8x128xbf16>
    %c0_15 = arith.constant 0 : index
    %c0_16 = arith.constant 0 : index
    %35 = vector.load %arg6[%c0_15, %c0_16] : memref<128x128xbf16, #tpu.memory_space<vmem>>, vector<128x128xbf16>
    %cst_17 = arith.constant dense<0.000000e+00> : vector<8x128xf32>
    %36 = tpu.matmul %34, %35, %cst_17 {dimension_numbers = #tpu.dot_dimension_numbers<[1], [0], [0], [1], [0, 0, 1, 1], [], []>} : vector<8x128xbf16>, vector<128x128xbf16>, vector<8x128xf32> -> vector<8x128xf32>
    %37 = vector.shape_cast %36 : vector<8x128xf32> to vector<1x8x128xf32>
    %c0_18 = arith.constant 0 : index
    %c0_19 = arith.constant 0 : index
    %38 = vector.load %arg7[%c0_18, %c0_19] : memref<1x128xf32, #tpu.memory_space<vmem>>, vector<1x128xf32>
    %39 = vector.shape_cast %38 : vector<1x128xf32> to vector<1x1x128xf32>
    %40 = vector.broadcast %39 : vector<1x1x128xf32> to vector<1x8x128xf32>
    %41 = arith.addf %37, %40 : vector<1x8x128xf32>
    %42 = arith.addf %33, %41 : vector<1x8x128xf32>
    %cst_20 = arith.constant 0.000000e+00 : f32
    %43 = vector.broadcast %cst_20 : f32 to vector<1x8x128xf32>
    %44 = arith.maximumf %42, %43 : vector<1x8x128xf32>
    %45 = arith.truncf %44 : vector<1x8x128xf32> to vector<1x8x128xbf16>
    %46 = arith.extf %45 : vector<1x8x128xbf16> to vector<1x8x128xf32>
    %cst_21 = arith.constant 0.000000e+00 : f32
    %47 = vector.broadcast %cst_21 : f32 to vector<1x2x128xf32>
    %48 = vector.extract_strided_slice %46 {offsets = [0, 0, 0], sizes = [1, 6, 128], strides = [1, 1, 1]} : vector<1x8x128xf32> to vector<1x6x128xf32>
    %49 = tpu.concatenate %47, %48 in 1 : vector<1x2x128xf32>, vector<1x6x128xf32> -> vector<1x8x128xf32>
    %50 = tpu.concatenate %49, %46 in 2 : vector<1x8x128xf32>, vector<1x8x128xf32> -> vector<1x8x256xf32>
    %51 = vector.shape_cast %50 : vector<1x8x256xf32> to vector<8x256xf32>
    %52 = arith.truncf %51 : vector<8x256xf32> to vector<8x256xbf16>
    %c0_22 = arith.constant 0 : index
    %c0_23 = arith.constant 0 : index
    %53 = vector.load %arg8[%c0_22, %c0_23] : memref<256x128xbf16, #tpu.memory_space<vmem>>, vector<256x128xbf16>
    %cst_24 = arith.constant dense<0.000000e+00> : vector<8x128xf32>
    %54 = tpu.matmul %52, %53, %cst_24 {dimension_numbers = #tpu.dot_dimension_numbers<[1], [0], [0], [1], [0, 0, 1, 1], [], []>} : vector<8x256xbf16>, vector<256x128xbf16>, vector<8x128xf32> -> vector<8x128xf32>
    %55 = vector.shape_cast %54 : vector<8x128xf32> to vector<1x8x128xf32>
    %c0_25 = arith.constant 0 : index
    %c0_26 = arith.constant 0 : index
    %56 = vector.load %arg9[%c0_25, %c0_26] : memref<1x128xf32, #tpu.memory_space<vmem>>, vector<1x128xf32>
    %57 = vector.shape_cast %56 : vector<1x128xf32> to vector<1x1x128xf32>
    %58 = vector.broadcast %57 : vector<1x1x128xf32> to vector<1x8x128xf32>
    %59 = arith.addf %55, %58 : vector<1x8x128xf32>
    %cst_27 = arith.constant 0.000000e+00 : f32
    %60 = vector.broadcast %cst_27 : f32 to vector<1x8x128xf32>
    %61 = arith.maximumf %59, %60 : vector<1x8x128xf32>
    %62 = arith.truncf %61 : vector<1x8x128xf32> to vector<1x8x128xbf16>
    %63 = arith.extf %62 : vector<1x8x128xbf16> to vector<1x8x128xf32>
    %cst_28 = arith.constant 0.000000e+00 : f32
    %64 = vector.broadcast %cst_28 : f32 to vector<1x2x128xf32>
    %65 = vector.extract_strided_slice %63 {offsets = [0, 0, 0], sizes = [1, 6, 128], strides = [1, 1, 1]} : vector<1x8x128xf32> to vector<1x6x128xf32>
    %66 = tpu.concatenate %64, %65 in 1 : vector<1x2x128xf32>, vector<1x6x128xf32> -> vector<1x8x128xf32>
    %67 = tpu.concatenate %66, %63 in 2 : vector<1x8x128xf32>, vector<1x8x128xf32> -> vector<1x8x256xf32>
    %68 = vector.shape_cast %67 : vector<1x8x256xf32> to vector<8x256xf32>
    %69 = arith.truncf %68 : vector<8x256xf32> to vector<8x256xbf16>
    %c0_29 = arith.constant 0 : index
    %c0_30 = arith.constant 0 : index
    %70 = vector.load %arg10[%c0_29, %c0_30] : memref<256x128xbf16, #tpu.memory_space<vmem>>, vector<256x128xbf16>
    %cst_31 = arith.constant dense<0.000000e+00> : vector<8x128xf32>
    %71 = tpu.matmul %69, %70, %cst_31 {dimension_numbers = #tpu.dot_dimension_numbers<[1], [0], [0], [1], [0, 0, 1, 1], [], []>} : vector<8x256xbf16>, vector<256x128xbf16>, vector<8x128xf32> -> vector<8x128xf32>
    %72 = vector.shape_cast %71 : vector<8x128xf32> to vector<1x8x128xf32>
    %c0_32 = arith.constant 0 : index
    %c0_33 = arith.constant 0 : index
    %73 = vector.load %arg11[%c0_32, %c0_33] : memref<1x128xf32, #tpu.memory_space<vmem>>, vector<1x128xf32>
    %74 = vector.shape_cast %73 : vector<1x128xf32> to vector<1x1x128xf32>
    %75 = vector.broadcast %74 : vector<1x1x128xf32> to vector<1x8x128xf32>
    %76 = arith.addf %72, %75 : vector<1x8x128xf32>
    %cst_34 = arith.constant 0.000000e+00 : f32
    %77 = vector.broadcast %cst_34 : f32 to vector<1x8x128xf32>
    %78 = arith.maximumf %76, %77 : vector<1x8x128xf32>
    %79 = arith.extf %45 : vector<1x8x128xbf16> to vector<1x8x128xf32>
    %80 = arith.addf %78, %79 : vector<1x8x128xf32>
    %cst_35 = arith.constant 0.000000e+00 : f32
    %81 = vector.broadcast %cst_35 : f32 to vector<1x8x128xf32>
    %82 = arith.maximumf %80, %81 : vector<1x8x128xf32>
    %83 = arith.truncf %82 : vector<1x8x128xf32> to vector<1x8x128xbf16>
    %84 = vector.extract_strided_slice %83 {offsets = [0, 7, 0], sizes = [1, 1, 128], strides = [1, 1, 1]} : vector<1x8x128xbf16> to vector<1x1x128xbf16>
    %85 = vector.shape_cast %84 : vector<1x1x128xbf16> to vector<1x128xbf16>
    %c0_36 = arith.constant 0 : index
    %c0_37 = arith.constant 0 : index
    %86 = vector.load %arg12[%c0_36, %c0_37] : memref<128x128xbf16, #tpu.memory_space<vmem>>, vector<128x128xbf16>
    %cst_38 = arith.constant dense<0.000000e+00> : vector<1x128xf32>
    %87 = tpu.matmul %85, %86, %cst_38 {dimension_numbers = #tpu.dot_dimension_numbers<[1], [0], [0], [1], [0, 0, 1, 1], [], []>} : vector<1x128xbf16>, vector<128x128xbf16>, vector<1x128xf32> -> vector<1x128xf32>
    %c0_39 = arith.constant 0 : index
    %c0_40 = arith.constant 0 : index
    %88 = vector.load %arg13[%c0_39, %c0_40] : memref<1x128xf32, #tpu.memory_space<vmem>>, vector<1x128xf32>
    %89 = arith.addf %87, %88 : vector<1x128xf32>
    %cst_41 = arith.constant 0.000000e+00 : f32
    %90 = vector.broadcast %cst_41 : f32 to vector<1x128xf32>
    %91 = arith.subf %90, %89 : vector<1x128xf32>
    %92 = math.exp %91 : vector<1x128xf32>
    %cst_42 = arith.constant 1.000000e+00 : f32
    %93 = vector.broadcast %cst_42 : f32 to vector<1x128xf32>
    %94 = arith.addf %93, %92 : vector<1x128xf32>
    %cst_43 = arith.constant 1.000000e+00 : f32
    %95 = vector.broadcast %cst_43 : f32 to vector<1x128xf32>
    %96 = arith.divf %95, %94 : vector<1x128xf32>
    %97 = vector.shape_cast %96 : vector<1x128xf32> to vector<1x1x128xf32>
    %c0_44 = arith.constant 0 : index
    %c0_45 = arith.constant 0 : index
    %c0_46 = arith.constant 0 : index
    %98 = vector.load %arg14[%c0_44, %c0_45, %c0_46] : memref<1x1x128xf32, #tpu.memory_space<vmem>>, vector<1x1x128xf32>
    tpu.vector_store %arg14[%c0_44, %c0_45, %c0_46], %97 {strides = array<i32>} : memref<1x1x128xf32, #tpu.memory_space<vmem>>, vector<1x1x128xf32>,
    return
  }
  func.func @transform_0(%arg0: i32) -> (i32, i32, i32) {
    %c0_i32 = arith.constant 0 : i32
    %c0_i32_0 = arith.constant 0 : i32
    %c0_i32_1 = arith.constant 0 : i32
    return %arg0, %c0_i32, %c0_i32_0 : i32, i32, i32
  }
  func.func @transform_1(%arg0: i32) -> (i32, i32) {
    %c0_i32 = arith.constant 0 : i32
    %c0_i32_0 = arith.constant 0 : i32
    %c0_i32_1 = arith.constant 0 : i32
    return %c0_i32, %c0_i32_0 : i32, i32
  }
  func.func @transform_2(%arg0: i32) -> (i32, i32) {
    %c0_i32 = arith.constant 0 : i32
    %c0_i32_0 = arith.constant 0 : i32
    %c0_i32_1 = arith.constant 0 : i32
    return %c0_i32, %c0_i32_0 : i32, i32
  }
  func.func @transform_3(%arg0: i32) -> (i32, i32) {
    %c0_i32 = arith.constant 0 : i32
    %c0_i32_0 = arith.constant 0 : i32
    %c0_i32_1 = arith.constant 0 : i32
    return %c0_i32, %c0_i32_0 : i32, i32
  }
  func.func @transform_4(%arg0: i32) -> (i32, i32) {
    %c0_i32 = arith.constant 0 : i32
    %c0_i32_0 = arith.constant 0 : i32
    %c0_i32_1 = arith.constant 0 : i32
    return %c0_i32, %c0_i32_0 : i32, i32
  }
  func.func @transform_5(%arg0: i32) -> (i32, i32) {
    %c0_i32 = arith.constant 0 : i32
    %c0_i32_0 = arith.constant 0 : i32
    %c0_i32_1 = arith.constant 0 : i32
    return %c0_i32, %c0_i32_0 : i32, i32
  }
  func.func @transform_6(%arg0: i32) -> (i32, i32) {
    %c0_i32 = arith.constant 0 : i32
    %c0_i32_0 = arith.constant 0 : i32
    %c0_i32_1 = arith.constant 0 : i32
    return %c0_i32, %c0_i32_0 : i32, i32
  }
  func.func @transform_7(%arg0: i32) -> (i32, i32) {
    %c0_i32 = arith.constant 0 : i32
    %c0_i32_0 = arith.constant 0 : i32
    %c0_i32_1 = arith.constant 0 : i32
    return %c0_i32, %c0_i32_0 : i32, i32
  }
  func.func @transform_8(%arg0: i32) -> (i32, i32) {
    %c0_i32 = arith.constant 0 : i32
    %c0_i32_0 = arith.constant 0 : i32
    %c0_i32_1 = arith.constant 0 : i32
    return %c0_i32, %c0_i32_0 : i32, i32
  }
  func.func @transform_9(%arg0: i32) -> (i32, i32) {
    %c0_i32 = arith.constant 0 : i32
    %c0_i32_0 = arith.constant 0 : i32
    %c0_i32_1 = arith.constant 0 : i32
    return %c0_i32, %c0_i32_0 : i32, i32
  }
  func.func @transform_10(%arg0: i32) -> (i32, i32) {
    %c0_i32 = arith.constant 0 : i32
    %c0_i32_0 = arith.constant 0 : i32
    %c0_i32_1 = arith.constant 0 : i32
    return %c0_i32, %c0_i32_0 : i32, i32
  }
  func.func @transform_11(%arg0: i32) -> (i32, i32) {
    %c0_i32 = arith.constant 0 : i32
    %c0_i32_0 = arith.constant 0 : i32
    %c0_i32_1 = arith.constant 0 : i32
    return %c0_i32, %c0_i32_0 : i32, i32
  }
  func.func @transform_12(%arg0: i32) -> (i32, i32) {
    %c0_i32 = arith.constant 0 : i32
    %c0_i32_0 = arith.constant 0 : i32
    %c0_i32_1 = arith.constant 0 : i32
    return %c0_i32, %c0_i32_0 : i32, i32
  }
  func.func @transform_13(%arg0: i32) -> (i32, i32, i32) {
    %c0_i32 = arith.constant 0 : i32
    %c0_i32_0 = arith.constant 0 : i32
    %c0_i32_1 = arith.constant 0 : i32
    return %arg0, %c0_i32, %c0_i32_0 : i32, i32, i32
  }
}

</mosaic_0001>

<bundles_post_ra>
// kernel: tpu_custom_call.1
= control target key start
LH: loop header
LB: loop body
LE: loop exit
PB: predicated region body
PF: predicated region fallthrough
CT: control target
= control target key end

     0   :  { %s2741_s0 = inlined_call_operand.hbm [shape: bf16[2,8,128], index: 0, kind: input, shape index: {}]   ;;  %s2742_s1 = inlined_call_operand.hbm [shape: bf16[256,128], index: 1, kind: input, shape index: {}]   ;;  %s2743_s2 = inlined_call_operand.vmem [shape: f32[1,128], index: 2, kind: input, shape index: {}]   ;;  %s2744_s3 = inlined_call_operand.hbm [shape: bf16[256,128], index: 3, kind: input, shape index: {}]   ;;  %s2745_s4 = inlined_call_operand.vmem [shape: f32[1,128], index: 4, kind: input, shape index: {}]   ;;  %s2746_s5 = inlined_call_operand.hbm [shape: bf16[128,128], index: 5, kind: input, shape index: {}]   ;;  %s2747_s6 = inlined_call_operand.vmem [shape: f32[1,128], index: 6, kind: input, shape index: {}]   ;;  %s2748_s7 = inlined_call_operand.hbm [shape: bf16[256,128], index: 7, kind: input, shape index: {}]   ;;  %s2749_s8 = inlined_call_operand.vmem [shape: f32[1,128], index: 8, kind: input, shape index: {}]   ;;  %s2750_s9 = inlined_call_operand.hbm [shape: bf16[256,128], index: 9, kind: input, shape index: {}]   ;;  %s2751_s10 = inlined_call_operand.vmem [shape: f32[1,128], index: 10, kind: input, shape index: {}]   ;;  %s2752_s11 = inlined_call_operand.hbm [shape: bf16[128,128], index: 11, kind: input, shape index: {}]   ;;  %s2753_s12 = inlined_call_operand.vmem [shape: f32[1,128], index: 12, kind: input, shape index: {}]   ;;  %s2754_s13 = inlined_call_operand.hbm [shape: f32[2,1,128], index: 13, kind: output, shape index: {}]  }
   0x1   :  { %2756 = sst [smem:[#allocation21_spill]] %s2742_s1 }
   0x2   :  { %2757 = sst [smem:[#allocation22_spill]] %s2744_s3 }
   0x3   :  { %2758 = sst [smem:[#allocation23_spill]] %s2746_s5 }
   0x4   :  { %2759 = sst [smem:[#allocation24_spill]] %s2748_s7 }
   0x5   :  { %2760 = sst [smem:[#allocation25_spill]] %s2750_s9 }
   0x6   :  { %2761 = sst [smem:[#allocation26_spill]] %s2752_s11 }
   0x7   :  { %2762 = sst [smem:[#allocation27_spill]] %s2754_s13 }
   0x8   :  { %18 = vsyncpa [#allocation3], 0 }
   0x9   :  { %20 = vsyncpa [#allocation3 + $0x1], 0 }
   0xa   :  { %21 = vsyncpa [#allocation6], 0 }
   0xb   :  { %22 = vsyncpa [#allocation9], 0 }
   0xc   :  { %23 = vsyncpa [#allocation12], 0 }
   0xd   :  { %24 = vsyncpa [#allocation4], 0 }
   0xe   :  { %26 = vsyncpa [#allocation4 + $0x1], 0  ;;  %s2486_s25 = smov 0   ;;  %s2488_s26 = smov 0  }
   0xf   :  { %s2490_s27 = smov 0   ;;  %s2492_s28 = smov 0  }
  0x10 LB: > { %s2763_s1 = sld [smem:[#allocation21_spill]]  ;;  %s2510_s15 = sadd.s32 4294967295, %s2406_s28   ;;  %s2406_s28 = sphi %s2492_s28, %s2787_s28   ;;  %s2402_s27 = sphi %s2490_s27, %s2786_s27   ;;  %s2398_s26 = sphi %s2488_s26, %s2785_s26   ;;  %s2394_s25 = sphi %s2486_s25, %s2784_s25  }
  0x11   : > { %p1560_p0 = scmp.ge.s32.totalorder %s2406_s28, 1  ;;  %p53_p1 = scmp.eq.s32.totalorder %s2510_s15, 0 }
  0x12   : > { %p341_p2 = scmp.lt.s32.totalorder %s2406_s28, 3  ;;  %s2408_s17 = smov [#allocation5]  }
  0x13   : > { %s354_s18 = sshll.u32 %s2408_s17, 4  ;;  %s2765_s5 = sld [smem:[#allocation23_spill]]  ;;  %s355_s18 = int_to_ptr.vmem [resolvable:$true] %s354_s18 }
  0x14   : > { %p2515_p3 = pnand %p1560_p0, %p341_p2  ;;  %s2767_s9 = sld [smem:[#allocation25_spill]] }
  0x15   : > { %s2409_s30 = smov [#allocation8]   ;;  %s2411_s13 = smov 4  }
  0x16   : > { %s352_s14 = sshll.u32 %s2763_s1, 4  ;;  %p2028_p4 = pneg %p2515_p3  ;;  %s353_s14 = int_to_ptr.hbm [resolvable:$true] %s352_s14 }
  0x17   : > { %s388_s17 = sshll.u32 %s2409_s30, 4  ;;  %s2410_s1 = smov 64   ;;  %s389_s17 = int_to_ptr.vmem [resolvable:$true] %s388_s17 }
  0x18   : > { %p2527_p6 = pnand %p2028_p4, %p53_p1  ;;  %s2768_s3 = sld [smem:[#allocation22_spill]] }
  0x19   : > { %s386_s21 = sshll.u32 %s2765_s5, 4  ;;  %s2412_s24 = smov [#allocation11]   ;;  %s387_s21 = int_to_ptr.hbm [resolvable:$true] %s386_s21 }
  0x1a   : > { %s420_s29 = sshll.u32 %s2767_s9, 4  ;;  %s422_s30 = sshll.u32 %s2412_s24, 4  ;;  %s421_s29 = int_to_ptr.hbm [resolvable:$true] %s420_s29  ;;  %s423_s30 = int_to_ptr.vmem [resolvable:$true] %s422_s30 }
  0x1b   : > { %2031 = dma.hbm_to_vmem [thread:$0]  (!%p2527_p6), %s353_s14, 2048, %s355_s18, [#allocation6], %s2410_s1, %s2410_s1, %s2411_s13  }
  0x1c   : > { %2037 = dma.hbm_to_vmem [thread:$0]  (!%p2527_p6), %s387_s21, 1024, %s389_s17, [#allocation9], %s2410_s1, %s2410_s1, %s2411_s13  }
  0x1d   : > { %2043 = dma.hbm_to_vmem [thread:$0]  (!%p2527_p6), %s421_s29, 2048, %s423_s30, [#allocation12], %s2410_s1, %s2410_s1, %s2411_s13  }
  0x1e   : > { %s369_s23 = sshll.u32 %s2768_s3, 4  ;;  %s2413_s14 = smov [#allocation7]   ;;  %s370_s23 = int_to_ptr.hbm [resolvable:$true] %s369_s23 }
  0x1f   : > { %s371_s18 = sshll.u32 %s2413_s14, 4  ;;  %s2769_s7 = sld [smem:[#allocation24_spill]]  ;;  %s372_s18 = int_to_ptr.vmem [resolvable:$true] %s371_s18 }
  0x20   : > { %2034 = dma.hbm_to_vmem [thread:$0]  (!%p2527_p6), %s370_s23, 2048, %s372_s18, [#allocation6], %s2410_s1, %s2410_s1, %s2411_s13  }
  0x21   : > { %s2770_s11 = sld [smem:[#allocation26_spill]]  ;;  %s2414_s24 = smov [#allocation10]  }
  0x22   : > { %s405_s5 = sshll.u32 %s2414_s24, 4  ;;  %s2415_s23 = smov [#allocation13]   ;;  %s406_s5 = int_to_ptr.vmem [resolvable:$true] %s405_s5 }
  0x23   : > { %s439_s30 = sshll.u32 %s2415_s23, 4  ;;  %s1559_s14 = sadd.s32 4294967294, %s2406_s28   ;;  %s440_s30 = int_to_ptr.vmem [resolvable:$true] %s439_s30 }
  0x24   : > { %s2575_s18 = sadd.s32 1, %s2406_s28   ;;  %s39_s19 = sadd.s32 1, %s2402_s27 }
  0x25   : > { %s403_s17 = sshll.u32 %s2769_s7, 4  ;;  %s36_s21 = ssub.s32 %s2406_s28, %s2575_s18  ;;  %s404_s17 = int_to_ptr.hbm [resolvable:$true] %s403_s17 }
  0x26   : > { %2040 = dma.hbm_to_vmem [thread:$0]  (!%p2527_p6), %s404_s17, 2048, %s406_s5, [#allocation9], %s2410_s1, %s2410_s1, %s2411_s13  }
  0x27   : > { %s437_s20 = sshll.u32 %s2770_s11, 4  ;;  %p37_p7 = scmp.eq.s32.totalorder %s36_s21, 0  ;;  %s438_s20 = int_to_ptr.hbm [resolvable:$true] %s437_s20 }
  0x28   : > { %2046 = dma.hbm_to_vmem [thread:$0]  (!%p2527_p6), %s438_s20, 1024, %s440_s30, [#allocation12], %s2410_s1, %s2410_s1, %s2411_s13  }
  0x29   : > { %p46_p8 = scmp.ne.s32.totalorder %s2402_s27, %s2398_s26  ;;  %p47_p9 = scmp.eq.s32.totalorder %s2406_s28, 0 }
  0x2a   : > { %p52_p10 = scmp.ne.s32.totalorder %s2398_s26, %s2394_s25  ;;  %p328_p13 = scmp.eq.s32.totalorder %s2510_s15, 1 }
  0x2b   : > { %s2586_s17 = scalar_select %p37_p7, %s2402_s27, %s39_s19  }
  0x2c   : > { %p2588_p11 = por %p47_p9, %p46_p8  ;;  %p2594_p12 = por %p53_p1, %p52_p10 }
  0x2d   : > { %2771 = sst [smem:[#allocation20_spill]] %s2586_s17  ;;  %p334_p0 = scmp.eq.s32.totalorder %s1559_s14, 1 }
  0x2e   : > { %p2061_p2 = scmp.lt.s32.totalorder %s2406_s28, 2  ;;  %s456_s13 = sand.u32 1, %s2402_s27  }
  0x2f   : > { %p2601_p4 = por %p328_p13, %p46_p8  ;;  %p2605_p6 = por %p334_p0, %p52_p10 }
  0x30   : > { %s1568_s24 = sshll.u32 %s456_s13, 2  ;;  %s1569_s5 = sshll.u32 %s2406_s28, 2 }
  0x31   : > { %s464_s21 = scalar_lea.hbm %s2741_s0, %s1569_s5  ;;  %s460_s19 = scalar_lea.vmem [#allocation2], %s1568_s24 }
  0x32   : > { %s468_s3 = sshll.u32 %s460_s19, 4  ;;  %s466_s7 = sshll.u32 %s464_s21, 4  ;;  %s469_s3 = int_to_ptr.vmem [resolvable:$true] %s468_s3  ;;  %s467_s7 = int_to_ptr.hbm [resolvable:$true] %s466_s7 }
  0x33   : > { %p2615_p7 = pnand %p2061_p2, %p2588_p11  ;;  %s457_s9 = scalar_lea.sflag [#allocation3], %s456_s13 }
  0x34   : > { %s2298_s11 = sshra.s32 %s467_s7, 4  ;;  %s2305_s23 = scalar_lea.hbm %s2741_s0, 8  ;;  %s2299_s11 = int_to_ptr.hbm [resolvable:$true] %s2298_s11 }
  0x35   : > { %s2300_s17 = scalar_lea.hbm %s2299_s11, 4  ;;  %p2302_p9 = pneg %p2615_p7 }
  0x36   : > { %p2301_p8 = scmp.ne.s32.totalorder %s2299_s11, %s2300_s17  ;;  %p2306_p11 = scmp.lt.s32.totalorder %s2299_s11, %s2741_s0 }
  0x37   : > { %p2307_p0 = scmp.lt.s32.totalorder %s2305_s23, %s2300_s17 }
  0x38   : > { %p2303_p10 = pnand %p2302_p9, %p2301_p8 }
  0x39   : > { %p2308_p2 = por %p2307_p0, %p2306_p11 }
  0x3a   : > { %p2304_p13 = pneg %p2303_p10 }
  0x3c   : > { %p2309_p5 = pnand %p2308_p2, %p2304_p13 }
  0x3e   : > { %2312 = shalt.err (!%p2309_p5)
}
  0x3f   : > { %2050 = dma.hbm_to_vmem [thread:$0]  (!%p2615_p7), %s467_s7, 64, %s469_s3, %s457_s9  }
  0x40   : > { %477 = sbr.rel (%p2515_p3) target bundleno = 848 (0x350), region = 72  ;;  %s2632_s13 = sand.u32 (!%p2515_p3), 1, %s2398_s26  }
  0x41   : > { %s1571_s21 = sshll.u32 (!%p2515_p3), %s2632_s13, 2  ;;  %s480_s19 = scalar_lea.sflag (!%p2515_p3), [#allocation3], %s2632_s13 }
  0x42   : > { %s2636_s24 = scalar_lea.vmem (!%p2515_p3), [#allocation2], %s1571_s21 }
  0x45   : > { %2373 = dma.done.wait (%p2594_p12), %s480_s19, 64  }
  0x46   : > { %2375 = vsyncadd (%p2594_p12), %s480_s19, 4294967232 }
  0x47   : > { %2377 = dma.done.wait (%p53_p1), [#allocation6], 4096  }
  0x48   : > { %2379 = vsyncadd (%p53_p1), [#allocation6], 4294963200 }
  0x49   : > { %2381 = dma.done.wait (%p53_p1), [#allocation9], 3072  }
  0x4a   : > { %2383 = vsyncadd (%p53_p1), [#allocation9], 4294964224 }
  0x4b   : > { %2385 = dma.done.wait (%p53_p1), [#allocation12], 3072  }
  0x4c   : > { %2387 = vsyncadd (%p53_p1), [#allocation12], 4294964224  ;;  %v1927_v0 = vld [vmem:[#allocation5 + $0x38] sm:$0xff]  ;;  %v1926_v2 = vld [vmem:[#allocation5 + $0x30] sm:$0xff]  ;;  %vm561_vm0 = vcmask 1040384   ;;  %vm982_vm3 = vcmask 1041408  }
  0x4d   : > { %v1935_v1 = vld [vmem:[#allocation5 + $0x78] sm:$0xff]  ;;  %693 = vmatpush.bf16.msra.mxu0 %v1927_v0  ;;  %v1934_v3 = vld [vmem:[#allocation5 + $0x70] sm:$0xff]  ;;  %v1925_v4 = vld [vmem:[#allocation5 + $0x28] sm:$0xff]  ;;  %s555_s7 = scalar_lea.vmem [#allocation14], %s2632_s13 }
  0x4e   : > { %706 = vmatpush.bf16.msra.mxu1 %v1935_v1  ;;  %v1933_v5 = vld [vmem:[#allocation5 + $0x68] sm:$0xff]  ;;  %v1951_v6 = vld [vmem:[#allocation7 + $0x78] sm:$0xff]  ;;  %v1950_v8 = vld [vmem:[#allocation7 + $0x70] sm:$0xff]  ;;  %s1434_s9 = sshll.u32 %s555_s7, 4  ;;  %s1435_s9 = int_to_ptr.vmem [resolvable:$true] %s1434_s9 }
  0x4f   : > { %v1943_v7 = vld [vmem:[#allocation7 + $0x38] sm:$0xff]  ;;  %874 = vmatpush.bf16.msra.mxu3 %v1951_v6  ;;  %v1942_v9 = vld [vmem:[#allocation7 + $0x30] sm:$0xff]  ;;  %v1924_v10 = vld [vmem:[#allocation5 + $0x20] sm:$0xff] }
  0x50   : > { %861 = vmatpush.bf16.msra.mxu2 %v1943_v7  ;;  %v1932_v11 = vld [vmem:[#allocation5 + $0x60] sm:$0xff]  ;;  %v1949_v12 = vld [vmem:[#allocation7 + $0x68] sm:$0xff]  ;;  %v1923_v14 = vld [vmem:[#allocation5 + $0x18] sm:$0xff] }
  0x51   : > { %694 = vmatpush.bf16.msra.mxu0 %v1926_v2  ;;  %v1941_v13 = vld [vmem:[#allocation7 + $0x28] sm:$0xff]  ;;  %v1931_v15 = vld [vmem:[#allocation5 + $0x58] sm:$0xff]  ;;  %v1948_v16 = vld [vmem:[#allocation7 + $0x60] sm:$0xff] }
  0x52   : > { %707 = vmatpush.bf16.msra.mxu1 %v1934_v3  ;;  %v1940_v17 = vld [vmem:[#allocation7 + $0x20] sm:$0xff]  ;;  %v1922_v18 = vld [vmem:[#allocation5 + $0x10] sm:$0xff]  ;;  %v556_v20 = vld [vmem:[%s2636_s24] sm:$0xf]  ;;  %s2781_s24 = sld [smem:[#allocation27_spill]] }
  0x53   : > { %875 = vmatpush.bf16.msra.mxu3 %v1950_v8  ;;  %v1930_v19 = vld [vmem:[#allocation5 + $0x50] sm:$0xff]  ;;  %v1947_v21 = vld [vmem:[#allocation7 + $0x58] sm:$0xff]  ;;  %v557_v23 = vunpack.c.l.bf16 %v556_v20  ;;  %v1921_v24 = vld [vmem:[#allocation5 + $0x8] sm:$0xff] }
  0x54   : > { %862 = vmatpush.bf16.msra.mxu2 %v1942_v9  ;;  %v1939_v22 = vld [vmem:[#allocation7 + $0x18] sm:$0xff]  ;;  %v1929_v25 = vld [vmem:[#allocation5 + $0x48] sm:$0xff]  ;;  %v1946_v26 = vld [vmem:[#allocation7 + $0x50] sm:$0xff] }
  0x55   : > { %695 = vmatpush.bf16.msra.mxu0 %v1925_v4  ;;  %v559_v27 = vrot.slane %v557_v23, 7  ;;  %v1920_v28 = vld [vmem:[#allocation5] sm:$0xff]  ;;  %vm2655_vm1 = vmneg %vm561_vm0  ;;  %v1959_v31 = vld [vmem:[#allocation8 + $0x38] sm:$0xff]  ;;  %v564_v33 = vpack.c.bf16 %v557_v23, %v557_v23 }
  0x56   : > { %708 = vmatpush.bf16.msra.mxu1 %v1933_v5  ;;  %v1928_v29 = vld [vmem:[#allocation5 + $0x40] sm:$0xff]  ;;  %vm1644_vm2 = vmpackc.low %vm2655_vm1, %vm2655_vm1  ;;  %v1958_v34 = vld [vmem:[#allocation8 + $0x30] sm:$0xff] }
  0x57   : > { %876 = vmatpush.bf16.msra.mxu3 %v1949_v12  ;;  %v1645_v32 = vpack.c.bf16 %v559_v27, %v559_v27  ;;  %v1957_v35 = vld [vmem:[#allocation8 + $0x28] sm:$0xff]  ;;  %v1956_v36 = vld [vmem:[#allocation8 + $0x20] sm:$0xff]  ;;  %v1955_v37 = vld [vmem:[#allocation8 + $0x18] sm:$0xff] }
  0x58   : > { %863 = vmatpush.bf16.msra.mxu2 %v1941_v13  ;;  %v1938_v38 = vld [vmem:[#allocation7 + $0x10] sm:$0xff]  ;;  %v1945_v39 = vld [vmem:[#allocation7 + $0x48] sm:$0xff]  ;;  %v1944_v42 = vld [vmem:[#allocation7 + $0x40] sm:$0xff]  ;;  %s1432_s3 = scalar_lea.hbm %s2781_s24, %s2510_s15  ;;  %s1424_s15 = scalar_lea.sflag [#allocation4], %s2632_s13 }
  0x59   : > { %696 = vmatpush.bf16.msra.mxu0 %v1924_v10  ;;  %v1954_v40 = vld [vmem:[#allocation8 + $0x10] sm:$0xff]  ;;  %v1937_v41 = vld [vmem:[#allocation7 + $0x8] sm:$0xff]  ;;  %v1936_v44 = vld [vmem:[#allocation7] sm:$0xff]  ;;  %s1436_s11 = sshll.u32 %s1432_s3, 4  ;;  %s2348_s5 = scalar_lea.hbm %s2781_s24, 2  ;;  %s1437_s11 = int_to_ptr.hbm [resolvable:$true] %s1436_s11 }
  0x5a   : > { %709 = vmatpush.bf16.msra.mxu1 %v1932_v11  ;;  %v1953_v43 = vld [vmem:[#allocation8 + $0x8] sm:$0xff]  ;;  %v1952_v45 = vld [vmem:[#allocation8] sm:$0xff]  ;;  %v1975_v46 = vld [vmem:[#allocation10 + $0x78] sm:$0xff]  ;;  %s2342_s16 = sshra.s32 %s1437_s11, 4  ;;  %s2343_s16 = int_to_ptr.hbm [resolvable:$true] %s2342_s16 }
  0x5b   : > { %877 = vmatpush.bf16.msra.mxu3 %v1948_v16  ;;  %v1967_v47 = vld [vmem:[#allocation10 + $0x38] sm:$0xff]  ;;  %v1974_v48 = vld [vmem:[#allocation10 + $0x70] sm:$0xff]  ;;  %v1973_v50 = vld [vmem:[#allocation10 + $0x68] sm:$0xff]  ;;  %s2344_s17 = scalar_lea.hbm %s2343_s16, 1  ;;  %p2349_p12 = scmp.lt.s32.totalorder %s2343_s16, %s2781_s24 }
  0x5c   : > { %864 = vmatpush.bf16.msra.mxu2 %v1940_v17  ;;  %v1966_v49 = vld [vmem:[#allocation10 + $0x30] sm:$0xff]  ;;  %v2109_v51 = vld [vmem:[%s2743_s2] ss:$0 sm:$0xff]  ;;  %v1965_v62 = vld [vmem:[#allocation10 + $0x28] sm:$0xff]  ;;  %p2345_p1 = scmp.ne.s32.totalorder %s2343_s16, %s2344_s17  ;;  %p2350_p7 = scmp.lt.s32.totalorder %s2348_s5, %s2344_s17 }
  0x5d   : > { %697 = vmatpush.bf16.msra.mxu0 %v1923_v14  ;;  %v1972_v0 = vld [vmem:[#allocation10 + $0x60] sm:$0xff]  ;;  %v1971_v2 = vld [vmem:[#allocation10 + $0x58] sm:$0xff]  ;;  %v1970_v5 = vld [vmem:[#allocation10 + $0x50] sm:$0xff] }
  0x5e   : > { %710 = vmatpush.bf16.msra.mxu1 %v1931_v15  ;;  %v1964_v1 = vld [vmem:[#allocation10 + $0x20] sm:$0xff]  ;;  %v1963_v3 = vld [vmem:[#allocation10 + $0x18] sm:$0xff]  ;;  %v1962_v6 = vld [vmem:[#allocation10 + $0x10] sm:$0xff]  ;;  %p2346_p3 = pnand %p2345_p1, %p2601_p4  ;;  %p2351_p8 = por %p2350_p7, %p2349_p12 }
  0x5f   : > { %878 = vmatpush.bf16.msra.mxu3 %v1947_v21  ;;  %v1969_v7 = vld [vmem:[#allocation10 + $0x48] sm:$0xff]  ;;  %v1968_v9 = vld [vmem:[#allocation10 + $0x40] sm:$0xff]  ;;  %v1991_v11 = vld [vmem:[#allocation11 + $0x78] sm:$0xff] }
  0x60   : > { %865 = vmatpush.bf16.msra.mxu2 %v1939_v22  ;;  %v1961_v8 = vld [vmem:[#allocation10 + $0x8] sm:$0xff]  ;;  %v1960_v10 = vld [vmem:[#allocation10] sm:$0xff]  ;;  %v1983_v12 = vld [vmem:[#allocation11 + $0x38] sm:$0xff]  ;;  %p2347_p5 = pneg %p2346_p3 }
  0x61   : > { %698 = vmatpush.bf16.msra.mxu0 %v1922_v18  ;;  %v1990_v13 = vld [vmem:[#allocation11 + $0x70] sm:$0xff]  ;;  %v1989_v15 = vld [vmem:[#allocation11 + $0x68] sm:$0xff]  ;;  %v1988_v17 = vld [vmem:[#allocation11 + $0x60] sm:$0xff] }
  0x62   : > { %711 = vmatpush.bf16.msra.mxu1 %v1930_v19  ;;  %v1982_v14 = vld [vmem:[#allocation11 + $0x30] sm:$0xff]  ;;  %v1981_v16 = vld [vmem:[#allocation11 + $0x28] sm:$0xff]  ;;  %v1980_v18 = vld [vmem:[#allocation11 + $0x20] sm:$0xff]  ;;  %p2352_p9 = pnand %p2351_p8, %p2347_p5 }
  0x63   : > { %879 = vmatpush.bf16.msra.mxu3 %v1946_v26  ;;  %v2111_v21 = vld [vmem:[%s2745_s4] ss:$0 sm:$0xff]  ;;  %vm2681_vm4 = vmneg %vm982_vm3 }
  0x64   : > { %866 = vmatpush.bf16.msra.mxu2 %v1938_v38  ;;  %vm1814_vm5 = vmpackc.low %vm2681_vm4, %vm2681_vm4  ;;  %v1979_v38 = vld [vmem:[#allocation11 + $0x18] sm:$0xff] }
  0x65   : > { %699 = vmatpush.bf16.msra.mxu0 %v1921_v24  ;;  %v1987_v24 = vld [vmem:[#allocation11 + $0x58] sm:$0xff] }
  0x66   : > { %712 = vmatpush.bf16.msra.mxu1 %v1929_v25 }
  0x67   : > { %880 = vmatpush.bf16.msra.mxu3 %v1945_v39  ;;  %v1986_v39 = vld [vmem:[#allocation11 + $0x50] sm:$0xff] }
  0x68   : > { %867 = vmatpush.bf16.msra.mxu2 %v1937_v41  ;;  %v1985_v41 = vld [vmem:[#allocation11 + $0x48] sm:$0xff] }
  0x69   : > { %700 = vmatpush.bf16.msra.mxu0 %v1920_v28 }
  0x6a   : > { %713 = vmatpush.bf16.msra.mxu1 %v1928_v29 }
  0x6b   : > { %881 = vmatpush.bf16.msra.mxu3 %v1944_v42  ;;  %v1977_v42 = vld [vmem:[#allocation11 + $0x8] sm:$0xff] }
  0x6c   : > { %1646 = vmatmul.msk.bf16.vlgmr.msra.gmra.mxu0 %vm1644_vm2, %v1645_v32  ;;  %868 = vmatpush.bf16.msra.mxu2 %v1936_v44  ;;  %v1976_v44 = vld [vmem:[#allocation11] sm:$0xff] }
  0x6d   : > { %957 = vmatpush.bf16.msrb.mxu0 %v1959_v31  ;;  %714 = vmatmul.bf16.vlgmr.msra.gmra.mxu1 %v564_v33 }
  0x6e   : > { %1114 = vmatpush.bf16.msrb.mxu1 %v1967_v47  ;;  %v2112_v47 = vld [vmem:[%s2749_s8] ss:$0 sm:$0xff] }
  0x6f   : > { %1282 = vmatpush.bf16.msrb.mxu3 %v1983_v12 }
  0x70   : > { %1127 = vmatpush.bf16.msrb.mxu2 %v1975_v46 }
  0x71   : > { %958 = vmatpush.bf16.msrb.mxu0 %v1958_v34 }
  0x72   : > { %1115 = vmatpush.bf16.msrb.mxu1 %v1966_v49 }
  0x73   : > { %1283 = vmatpush.bf16.msrb.mxu3 %v1982_v14 }
  0x74   : > { %1128 = vmatpush.bf16.msrb.mxu2 %v1974_v48 }
  0x75   : > { %959 = vmatpush.bf16.msrb.mxu0 %v1957_v35 }
  0x76   : > { %1116 = vmatpush.bf16.msrb.mxu1 %v1965_v62  ;;  %v1993_v62 = vld [vmem:[#allocation13 + $0x8] sm:$0xff] }
  0x77   : > { %1284 = vmatpush.bf16.msrb.mxu3 %v1981_v16 }
  0x78   : > { %1129 = vmatpush.bf16.msrb.mxu2 %v1973_v50 }
  0x79   : > { %960 = vmatpush.bf16.msrb.mxu0 %v1956_v36 }
  0x7a   : > { %1117 = vmatpush.bf16.msrb.mxu1 %v1964_v1  ;;  %v2113_v1 = vld [vmem:[%s2751_s10] ss:$0 sm:$0xff] }
  0x7b   : > { %1285 = vmatpush.bf16.msrb.mxu3 %v1980_v18 }
  0x7c   : > { %1130 = vmatpush.bf16.msrb.mxu2 %v1972_v0 }
  0x7d   : > { %961 = vmatpush.bf16.msrb.mxu0 %v1955_v37 }
  0x7e   : > { %1118 = vmatpush.bf16.msrb.mxu1 %v1963_v3 }
  0x7f   : > { %1286 = vmatpush.bf16.msrb.mxu3 %v1979_v38 }
  0x80   : > { %1131 = vmatpush.bf16.msrb.mxu2 %v1971_v2 }
  0x81   : > { %962 = vmatpush.bf16.msrb.mxu0 %v1954_v40  ;;  %v1978_v40 = vld [vmem:[#allocation11 + $0x10] sm:$0xff] }
  0x82   : > { %1119 = vmatpush.bf16.msrb.mxu1 %v1962_v6 }
  0x83   : > { %1287 = vmatpush.bf16.msrb.mxu3 %v1978_v40 }
  0x84   : > { %1132 = vmatpush.bf16.msrb.mxu2 %v1970_v5 }
  0x85   : > { %963 = vmatpush.bf16.msrb.mxu0 %v1953_v43  ;;  %v1984_v43 = vld [vmem:[#allocation11 + $0x40] sm:$0xff] }
  0x86   : > { %1120 = vmatpush.bf16.msrb.mxu1 %v1961_v8 }
  0x87   : > { %1288 = vmatpush.bf16.msrb.mxu3 %v1977_v42 }
  0x88   : > { %1133 = vmatpush.bf16.msrb.mxu2 %v1969_v7 }
  0x89   : > { %964 = vmatpush.bf16.msrb.mxu0 %v1952_v45  ;;  %v1999_v45 = vld [vmem:[#allocation13 + $0x38] sm:$0xff] }
  0x8a   : > { %1121 = vmatpush.bf16.msrb.mxu1 %v1960_v10 }
  0x8b   : > { %1289 = vmatpush.bf16.msrb.mxu3 %v1976_v44 }
  0x8c   : > { %965 = vmatmul.bf16.vlgmr.msrb.gmra.mxu0 %v556_v20  ;;  %1134 = vmatpush.bf16.msrb.mxu2 %v1968_v9  ;;  %v2110_v20 = vld [vmem:[%s2747_s6] ss:$0 sm:$0xff] }
  0x8d   : > { %1295 = vmatpush.bf16.msra.mxu0 %v1991_v11 }
  0x8e   : > { %1390 = vmatpush.bf16.msra.mxu1 %v1999_v45 }
  0x91   : > { %1296 = vmatpush.bf16.msra.mxu0 %v1990_v13 }
  0x95   : > { %1297 = vmatpush.bf16.msra.mxu0 %v1989_v15  ;;  %v1333_v15 = vld [vmem:[%s2753_s12] sm:$0x1] }
  0x99   : > { %1298 = vmatpush.bf16.msra.mxu0 %v1988_v17 }
  0x9d   : > { %1299 = vmatpush.bf16.msra.mxu0 %v1987_v24 }
  0xa1   : > { %1300 = vmatpush.bf16.msra.mxu0 %v1986_v39 }
  0xa5   : > { %1301 = vmatpush.bf16.msra.mxu0 %v1985_v41 }
  0xa9   : > { %1302 = vmatpush.bf16.msra.mxu0 %v1984_v43 }
  0xe9   : > { %v702_v52 = vpop.f32.mrf.mxu0 }
  0xea   : > { %v715_v53 = vpop.f32.mrf.mxu1 }
  0xeb   : > { %v716_v54 = vadd.f32 %v715_v53, %v702_v52 }
  0xed   : > { %v723_v55 = vadd.f32 %v2109_v51, %v716_v54 }
  0xef   : > { %v724_v56 = vmax.f32 %v723_v55, 0.0 }
  0xf1   : > { %v732_v57 = vpack.c.bf16 %v724_v56, %v724_v56  ;;  %v728_v58 = vrot.slane %v724_v56, 7  ;;  %v704_v59 = vpop.f32.mrf.mxu0 }
  0xf2   : > { %v717_v60 = vpop.f32.mrf.mxu1  ;;  %v1996_v59 = vld [vmem:[#allocation13 + $0x20] sm:$0xff] }
  0xf3   : > { %882 = vmatmul.bf16.vlgmr.msra.gmra.mxu3 %v732_v57  ;;  %v1714_v61 = vpack.c.bf16 %v728_v58, %v728_v58  ;;  %v1998_v57 = vld [vmem:[#allocation13 + $0x30] sm:$0xff]  ;;  %v1997_v58 = vld [vmem:[#allocation13 + $0x28] sm:$0xff]  ;;  %v1995_v60 = vld [vmem:[#allocation13 + $0x18] sm:$0xff] }
  0xf4   : > { %1391 = vmatpush.bf16.msra.mxu1 %v1998_v57 }
  0xf5   : > { %1715 = vmatmul.msk.bf16.vlgmr.msra.gmra.mxu2 %vm1644_vm2, %v1714_v61  ;;  %v1994_v61 = vld [vmem:[#allocation13 + $0x10] sm:$0xff] }
  0xf8   : > { %1392 = vmatpush.bf16.msra.mxu1 %v1997_v58 }
  0xfc   : > { %1393 = vmatpush.bf16.msra.mxu1 %v1996_v59 }
 0x100   : > { %1394 = vmatpush.bf16.msra.mxu1 %v1995_v60 }
 0x104   : > { %1395 = vmatpush.bf16.msra.mxu1 %v1994_v61 }
 0x108   : > { %1396 = vmatpush.bf16.msra.mxu1 %v1993_v62 }
 0x109   : > { %v966_v63 = vpop.f32.mrf.mxu0 }
 0x10a   : > { %v974_v25 = vadd.f32 %v2110_v20, %v966_v63  ;;  %v1992_v63 = vld [vmem:[#allocation13] sm:$0xff] }
 0x10c   : > { %1397 = vmatpush.bf16.msra.mxu1 %v1992_v63 }
 0x111   : > { %v968_v4 = vpop.f32.mrf.mxu0 }
 0x176   : > { %v883_v19 = vpop.f32.mrf.mxu3 }
 0x178   : > { %v870_v22 = vpop.f32.mrf.mxu2 }
 0x179   : > { %v884_v23 = vadd.f32 %v883_v19, %v870_v22 }
 0x17b   : > { %v891_v26 = vadd.f32 %v2111_v21, %v884_v23 }
 0x17d   : > { %v892_v27 = vmax.f32 %v891_v26, 0.0 }
 0x17e   : > { %v885_v28 = vpop.f32.mrf.mxu3 }
 0x17f   : > { %v975_v29 = vadd.f32 %v974_v25, %v892_v27 }
 0x180   : > { %v872_v30 = vpop.f32.mrf.mxu2 }
 0x181   : > { %v976_v31 = vmax.f32 %v975_v29, 0.0 }
 0x183   : > { %v977_v32 = vpack.c.bf16 %v976_v31, %v976_v31 }
 0x185   : > { %v978_v33 = vunpack.c.l.bf16 %v977_v32 }
 0x187   : > { %v985_v35 = vpack.c.bf16 %v978_v33, %v978_v33  ;;  %v980_v36 = vrot.slane %v978_v33, 6 }
 0x189   : > { %1135 = vmatmul.bf16.vlgmr.msrb.gmra.mxu2 %v985_v35  ;;  %v1815_v37 = vpack.c.bf16 %v980_v36, %v980_v36 }
 0x18b   : > { %1816 = vmatmul.msk.bf16.vlgmr.msrb.gmra.mxu1 %vm1814_vm5, %v1815_v37 }
 0x208   : > { %v1123_v46 = vpop.f32.mrf.mxu1 }
 0x20c   : > { %v1136_v48 = vpop.f32.mrf.mxu2 }
 0x20d   : > { %v1137_v49 = vadd.f32 %v1136_v48, %v1123_v46 }
 0x20f   : > { %v1144_v50 = vadd.f32 %v2112_v47, %v1137_v49 }
 0x210   : > { %v1125_v51 = vpop.f32.mrf.mxu1 }
 0x211   : > { %v1145_v52 = vmax.f32 %v1144_v50, 0.0 }
 0x213   : > { %v1149_v53 = vrot.slane %v1145_v52, 6  ;;  %v1153_v54 = vpack.c.bf16 %v1145_v52, %v1145_v52 }
 0x214   : > { %v1138_v55 = vpop.f32.mrf.mxu2 }
 0x215   : > { %v1884_v56 = vpack.c.bf16 %v1149_v53, %v1149_v53  ;;  %1303 = vmatmul.bf16.vlgmr.msra.gmra.mxu0 %v1153_v54 }
 0x217   : > { %1885 = vmatmul.msk.bf16.vlgmr.msrb.gmra.mxu3 %vm1814_vm5, %v1884_v56 }
 0x292   : > { %v1304_v0 = vpop.f32.mrf.mxu0 }
 0x29a   : > { %v1291_v2 = vpop.f32.mrf.mxu3  ;;  %v1306_v3 = vpop.f32.mrf.mxu0 }
 0x29b   : > { %v1305_v4 = vadd.f32 %v1304_v0, %v1291_v2 }
 0x29d   : > { %v1312_v5 = vadd.f32 %v2113_v1, %v1305_v4 }
 0x29f   : > { %v1313_v6 = vmax.f32 %v1312_v5, 0.0 }
 0x2a1   : > { %v1314_v7 = vadd.f32 %v1313_v6, %v978_v33 }
 0x2a2   : > { %v1293_v8 = vpop.f32.mrf.mxu3 }
 0x2a3   : > { %v1315_v9 = vmax.f32 %v1314_v7, 0.0 }
 0x2a5   : > { %v1316_v10 = vpack.c.bf16 %v1315_v9, %v1315_v9 }
 0x2a7   : > { %v1335_v11 = vunpack.c.l.b16 %v1316_v10 }
 0x2a9   : > { %v1336_v12 = vpack.c.b16 %v1335_v11, %v1335_v11 }
 0x2ab   : > { %v1338_v13 = vshrl.u32 %v1336_v12, 16 }
 0x2ad   : > { %v1340_v14 = vrot.slane %v1338_v13, 3 }
 0x2af   : > { %1398 = vmatmul.bf16.vlgmr.msra.gmra.mxu1 %v1340_v14 }
 0x32c   : > { %v1399_v16 = vpop.f32.mrf.mxu1 }
 0x32d   : > { %v1400_v17 = vadd.f32 %v1399_v16, %v1333_v15 }
 0x32f   : > { %v1403_v18 = vsub.f32 0.0, %v1400_v17 }
 0x331   : > { %v1404_v19 = vmul.f32 1.442695, %v1403_v18 }
 0x333   : > { %2114 = vpow2.f32 %v1404_v19 }
 0x334   : > { %v1401_v20 = vpop.f32.mrf.mxu1 }
 0x339   : > { %v2115_v21 = vpop.eup %2114 }
 0x33a   : > { %v1406_v22 = vadd.f32 1.0, %v2115_v21 }
 0x33c   : > { %2116 = vrcp.f32 %v1406_v22  ;;  %v1418_v26 = vand.u32 2147483648, %v1406_v22  ;;  %v1416_v28 = vand.u32 2147483647, %v1406_v22  ;;  %vm1412_vm7 = vweird.f32 %v1406_v22 }
 0x33e   : > { %v1419_v30 = vor.u32 1.1754944e-38, %v1418_v26  ;;  %vm1417_vm9 = vcmp.eq.f32.partialorder %v1416_v28, 8.507059e+37 }
 0x342   : > { %v2117_v23 = vpop.eup %2116 }
 0x343   : > { %v1408_v24 = vmul.f32 %v2117_v23, %v1406_v22  ;;  %vm1413_vm6 = vweird.f32 %v2117_v23 }
 0x344   : > { %vm1414_vm8 = vmor %vm1412_vm7, %vm1413_vm6 }
 0x345   : > { %v1409_v25 = vsub.f32 1.0, %v1408_v24 }
 0x347   : > { %v1410_v27 = vmul.f32 %v2117_v23, %v1409_v25 }
 0x349   : > { %v1411_v29 = vadd.f32 %v2117_v23, %v1410_v27 }
 0x34b   : > { %v1415_v31 = vsel %vm1414_vm8, %v2117_v23, %v1411_v29 }
 0x34c   : > { %v1420_v32 = vsel %vm1417_vm9, %v1419_v30, %v1415_v31 }
 0x34d   : > { %1422 = vst [vmem:[%s555_s7] sm:$0x1] %v1420_v32 }
 0x34e   : > { %2355 = shalt.err (!%p2352_p9)
}
 0x34f   : > { %2026 = dma.vmem_to_hbm [thread:$0]  (%p2601_p4), %s1435_s9, 16, %s1437_s11, %s1424_s15  }
 0x350 PF: > { %s1448_s13 = sand.u32 1, %s2394_s25   ;;  %p2782_p10 = scmp.ge.s32.totalorder %s2406_s28, 2 }
 0x351   : > { %s1449_s22 = scalar_lea.sflag [#allocation4], %s1448_s13 }
 0x352   : > { %p2052_p13 = pnand %p2782_p10, %p2605_p6 }
 0x354   : > { %p2053_p11 = pneg %p2052_p13 }
 0x356   : > { %2389 = dma.done.wait (%p2053_p11), %s1449_s22, 16  }
 0x357   : > { %2391 = vsyncadd (%p2053_p11), %s1449_s22, 4294967280  ;;  %s2783_s21 = sld [smem:[#allocation20_spill]]  ;;  %p29_p0 = scmp.ge.s32.totalorder %s2575_s18, 4  }
 0x358   : > { %s2784_s25 = smov %s2398_s26  ;;  %s2785_s26 = smov %s2402_s27 }
 0x359   : > { %s2787_s28 = smov %s2575_s18  ;;  %31 = sbr.rel (!%p29_p0) target bundleno = 16 (0x10), region = 141 }
 0x35d   : > { %s2786_s27 = smov %s2783_s21 }
 0x35e   :  { %1454 = vsyncpa [#allocation3], 1 }
 0x35f   :  { %1456 = vsyncpa [#allocation3 + $0x1], 1 }
 0x360   :  { %1457 = vsyncpa [#allocation6], 1 }
 0x361   :  { %1458 = vsyncpa [#allocation9], 1 }
 0x362   :  { %1459 = vsyncpa [#allocation12], 1 }
 0x363   :  { %1460 = vsyncpa [#allocation4], 1 }
 0x364   :  { %1462 = vsyncpa [#allocation4 + $0x1], 1 }

</bundles_post_ra>
